<compile_context>
chip_gen: v5e
topology: v5e:2x2
jax: 0.10.0
libtpu: 0.0.40
codegen_flags: <defaults>
</compile_context>

<pallas_src>
import jax
import jax.numpy as jnp
from jax.experimental import pallas as pl
from jax.experimental.pallas import tpu as pltpu


LANE = 128
SUBLANE = 8


def _round_up(x, m):
    return ((x + m - 1) // m) * m


def make_fused_kernel(num_layers):
    """One kernel computing every tower's full MLP on a batch tile."""
    L = num_layers

    def kernel(x_ref, *refs):
        # refs layout: w_0 (D, T*p0), w_1..w_{L-1} (T, p_in, p_out), b_all, out
        o_ref = refs[-1]
        b_ref = refs[-2]          # (L, max_slab) packed f32 biases
        w_refs = refs[:-2]

        # ---- Layer 0: shared x through the concatenated tower weights (one
        # wide lane-dense matmul, bf16 operands, f32 accumulation). ----
        w0 = w_refs[0][...]                                  # bf16 (D, T*p0)
        n0 = w0.shape[1]
        h = jnp.dot(x_ref[...].astype(jnp.bfloat16), w0,
                    preferred_element_type=jnp.float32)
        h = h + b_ref[0:1, :n0]
        if L > 1:                                            # hidden layer -> ReLU
            h = jnp.maximum(h, 0.0)

        # ---- Layers 1..L-1: per-tower stacked weights (NOT block-diagonal),
        # T small matmuls on 128-aligned static slices of h. ----
        for l in range(1, L):
            wl = w_refs[l]                                   # ref (T, p_in, p_out)
            T = wl.shape[0]
            p_in = wl.shape[1]
            p_out = wl.shape[2]
            hb = h.astype(jnp.bfloat16)
            parts = []
            for t in range(T):
                ht = hb[:, t * p_in:(t + 1) * p_in]          # static, lane-aligned
                parts.append(jnp.dot(ht, wl[t],
                                     preferred_element_type=jnp.float32))
            h = jnp.concatenate(parts, axis=1)               # (bm, T*p_out)
            h = h + b_ref[l:l + 1, :T * p_out]
            if l < L - 1:                                    # hidden layers get ReLU
                h = jnp.maximum(h, 0.0)

        # TODO(synk): for a predict-only path, fuse a per-task argmax here
        # (mask padded lanes with -inf) and emit a tiny int32 output instead
        # of the full logits slab.
        o_ref[...] = h.astype(o_ref.dtype)                   # lane-dense store

    return kernel


def _resident_spec(shape):
    """BlockSpec for a grid-invariant operand: full block, constant index map,
    single VMEM buffer (no double-buffering needed)."""
    ndim = len(shape)
    idx = lambda i, _n=ndim: (0,) * _n
    try:
        return pl.BlockSpec(shape, idx, pipeline_mode=pl.Buffered(1))
    except TypeError:   # older jax without pipeline_mode kwarg
        return pl.BlockSpec(shape, idx)


def fused_forward(x, packed_ws, b_all):
    """Run the fused multi-tower MLP. Returns a (B, T*p_out) logits slab."""
    B, in_dim = x.shape
    L = len(packed_ws)
    if L > 1:
        n_towers = packed_ws[-1].shape[0]
        out_slab = n_towers * packed_ws[-1].shape[-1]
    else:
        out_slab = packed_ws[0].shape[1]
    max_slab = b_all.shape[1]

    # Batch tiling: round to the sublane quantum; aim for >= 2 grid steps when
    # the batch allows it (v7x megacore sharding), cap the tile at 512 rows.
    b8 = _round_up(B, SUBLANE)
    if b8 >= 2 * SUBLANE:
        bm = min(512, _round_up((b8 + 1) // 2, SUBLANE))
    else:
        bm = b8
    b_pad = _round_up(b8, bm)
    if b_pad != B:
        x = jnp.pad(x, ((0, b_pad - B), (0, 0)))

    grid = (b_pad // bm,)

    in_specs = [pl.BlockSpec((bm, in_dim), lambda i: (i, 0))]        # x tile
    for w in packed_ws:                                              # resident weights
        in_specs.append(_resident_spec(w.shape))
    in_specs.append(_resident_spec(b_all.shape))                     # packed biases

    # Explicit VMEM budget: single-buffered resident weights + biases, double
    # buffered x/out tiles, plus live activation slabs, with 2x headroom.
    weight_bytes = sum(int(w.size) * w.dtype.itemsize for w in packed_ws)
    bias_bytes = int(b_all.size) * b_all.dtype.itemsize
    io_bytes = 2 * bm * in_dim * 4 + 2 * bm * out_slab * 4
    act_bytes = 3 * bm * max_slab * 4
    vmem_limit = int(min(64 * 1024 * 1024,
                         max(16 * 1024 * 1024,
                             2 * (weight_bytes + bias_bytes + io_bytes + act_bytes))))

    out = pl.pallas_call(
        make_fused_kernel(L),
        out_shape=jax.ShapeDtypeStruct((b_pad, out_slab), jnp.float32),
        grid=grid,
        in_specs=in_specs,
        out_specs=pl.BlockSpec((bm, out_slab), lambda i: (i, 0)),
        compiler_params=pltpu.CompilerParams(
            dimension_semantics=("parallel",),
            vmem_limit_bytes=vmem_limit),
    )(x, *packed_ws, b_all)
    return out[:B]


class SimpleMTLPallas:
    """JAX/Pallas re-implementation of SimpleMTL's forward pass (inference)."""

    def __init__(self, input_size, output_sizes, hidden_sizes, key):
        self.input_size = int(input_size)
        self.output_sizes = list(output_sizes)
        self.hidden_sizes = list(hidden_sizes)
        self.tasks = len(self.output_sizes)

        dims = [self.input_size] + self.hidden_sizes
        # Per-tower params, kept unpacked (f32) for the pure-JAX reference.
        self.tower_params = []  # per tower: (list_of_W (in,out), list_of_b (out,))
        for out_size in self.output_sizes:
            layer_dims = dims + [out_size]
            ws, bs = [], []
            for j in range(len(layer_dims) - 1):
                key, kw, kb = jax.random.split(key, 3)
                fan_in = layer_dims[j]
                bound = 1.0 / float(fan_in) ** 0.5
                # Matches nn.Linear's uniform(-1/sqrt(fan_in), 1/sqrt(fan_in)).
                w = jax.random.uniform(
                    kw, (layer_dims[j], layer_dims[j + 1]),
                    minval=-bound, maxval=bound, dtype=jnp.float32)
                b = jax.random.uniform(
                    kb, (layer_dims[j + 1],),
                    minval=-bound, maxval=bound, dtype=jnp.float32)
                ws.append(w)
                bs.append(b)
            self.tower_params.append((ws, bs))

        self._pack()

    def _pack(self):
        """Layer 0: concatenate tower columns. Layers >= 1: per-tower (T, p_in,
        p_out) stacks (no block-diagonal zeros). Per-tower widths padded to a
        128-lane multiple; weights cast to bf16; all biases in one f32 buffer."""
        T = self.tasks
        H = len(self.hidden_sizes)
        L = H + 1
        hid = self.hidden_sizes
        out_sizes = self.output_sizes
        max_out = max(out_sizes)

        # Per-tower padded output width of each layer.
        pw = [_round_up(hid[l], LANE) for l in range(H)] + [_round_up(max_out, LANE)]
        # TODO(synk): on v6e/v7x round pw up to 256 when the real widths exceed
        # 128 (256x256 MXU occupancy); kept 128 here since toy widths are <=128.
        slab_w = [T * p for p in pw]

        packed_ws = []

        # Layer 0: one wide concatenated weight (shared x through MXU once).
        W0 = jnp.zeros((self.input_size, slab_w[0]), dtype=jnp.float32)
        for t in range(T):
            w_t = self.tower_params[t][0][0]
            W0 = W0.at[:, t * pw[0]:t * pw[0] + w_t.shape[1]].set(w_t)
        packed_ws.append(W0.astype(jnp.bfloat16))

        # Layers >= 1: per-tower stacks.
        for l in range(1, L):
            p_in, p_out = pw[l - 1], pw[l]
            Wl = jnp.zeros((T, p_in, p_out), dtype=jnp.float32)
            for t in range(T):
                w_t = self.tower_params[t][0][l]
                Wl = Wl.at[t, :w_t.shape[0], :w_t.shape[1]].set(w_t)
            packed_ws.append(Wl.astype(jnp.bfloat16))

        # All biases packed into one (L, max_slab) f32 buffer — a single DMA.
        max_slab = max(slab_w)
        b_all = jnp.zeros((L, max_slab), dtype=jnp.float32)
        for l in range(L):
            for t in range(T):
                b_t = self.tower_params[t][1][l]
                c0 = t * pw[l]
                b_all = b_all.at[l, c0:c0 + b_t.shape[0]].set(b_t)

        self.packed_ws = packed_ws
        self.b_all = b_all
        self.pw = pw
        self.task_offsets = [t * pw[-1] for t in range(T)]

    def forward(self, x):
        slab = fused_forward(x, self.packed_ws, self.b_all)
        outs = []
        for t in range(self.tasks):
            off = self.task_offsets[t]
            outs.append(slab[:, off:off + self.output_sizes[t]])
        return outs

    def predict(self, x):
        # torch.max(logit[i], 0) is an argmax over classes for each row.
        logits = self.forward(x)
        return [jnp.argmax(l, axis=-1).astype(jnp.float32) for l in logits]


def reference_forward(x, tower_params):
    """Pure-JAX f32 per-tower reference for correctness checking."""
    outs = []
    for ws, bs in tower_params:
        h = x
        for l, (w, b) in enumerate(zip(ws, bs)):
            h = h @ w + b
            if l < len(ws) - 1:
                h = jnp.maximum(h, 0.0)
        outs.append(h)
    return outs


if __name__ == "__main__":
    key = jax.random.PRNGKey(0)
    key, xkey, pkey = jax.random.split(key, 3)

    batch = 8
    input_size = 32
    hidden_sizes = [64, 32]
    output_sizes = [4, 3]

    x = jax.random.normal(xkey, (batch, input_size), dtype=jnp.float32)

    model = SimpleMTLPallas(input_size, output_sizes, hidden_sizes, pkey)

    outs = model.forward(x)
    outs = [jax.block_until_ready(o) for o in outs]

    refs = reference_forward(x, model.tower_params)
    for o, r, osz in zip(outs, refs, output_sizes):
        assert o.shape == (batch, osz), (o.shape, (batch, osz))
        # Looser tolerance: kernel matmuls use bf16 operands (f32 accumulate).
        assert jnp.allclose(o, r, atol=5e-2, rtol=5e-2), "mismatch vs reference"

    preds = model.predict(x)
    _ = [jax.block_until_ready(p) for p in preds]

    print("KERNEL_OK")
</pallas_src>

<mosaic_0001>
module attributes {stable_mosaic.version = 11 : i64} {
  func.func @kernel(%arg0: i32, %arg1: memref<8x32xf32, #tpu.memory_space<vmem>>, %arg2: memref<32x256xbf16, #tpu.memory_space<vmem>>, %arg3: memref<2x128x128xbf16, #tpu.memory_space<vmem>>, %arg4: memref<2x128x128xbf16, #tpu.memory_space<vmem>>, %arg5: memref<3x256xf32, #tpu.memory_space<vmem>>, %arg6: memref<8x256xf32, #tpu.memory_space<vmem>>) attributes {dimension_semantics = [#tpu.dimension_semantics<parallel>], iteration_bounds = array<i64: 1>, scalar_prefetch = 0 : i64, scratch_operands = 0 : i64, tpu.core_type = #tpu.core_type<tc>, window_params = [{transform_indices = @transform_0, window_bounds = array<i64: 8, 32>}, {pipeline_mode = #tpu.pipeline_mode<synchronous>, transform_indices = @transform_1, window_bounds = array<i64: 32, 256>}, {pipeline_mode = #tpu.pipeline_mode<synchronous>, transform_indices = @transform_2, window_bounds = array<i64: 2, 128, 128>}, {pipeline_mode = #tpu.pipeline_mode<synchronous>, transform_indices = @transform_3, window_bounds = array<i64: 2, 128, 128>}, {pipeline_mode = #tpu.pipeline_mode<synchronous>, transform_indices = @transform_4, window_bounds = array<i64: 3, 256>}, {transform_indices = @transform_5, window_bounds = array<i64: 8, 256>}]} {
    %c0 = arith.constant 0 : index
    %c0_0 = arith.constant 0 : index
    %0 = vector.load %arg2[%c0, %c0_0] : memref<32x256xbf16, #tpu.memory_space<vmem>>, vector<32x256xbf16>
    %c0_1 = arith.constant 0 : index
    %c0_2 = arith.constant 0 : index
    %1 = vector.load %arg1[%c0_1, %c0_2] : memref<8x32xf32, #tpu.memory_space<vmem>>, vector<8x32xf32>
    %2 = arith.truncf %1 : vector<8x32xf32> to vector<8x32xbf16>
    %cst = arith.constant dense<0.000000e+00> : vector<8x256xf32>
    %3 = tpu.matmul %2, %0, %cst {dimension_numbers = #tpu.dot_dimension_numbers<[1], [0], [0], [1], [0, 0, 1, 1], [], []>} : vector<8x32xbf16>, vector<32x256xbf16>, vector<8x256xf32> -> vector<8x256xf32>
    %c0_3 = arith.constant 0 : index
    %c0_4 = arith.constant 0 : index
    %4 = vector.load %arg5[%c0_3, %c0_4] : memref<3x256xf32, #tpu.memory_space<vmem>>, vector<1x256xf32>
    %5 = vector.broadcast %4 : vector<1x256xf32> to vector<8x256xf32>
    %6 = arith.addf %3, %5 : vector<8x256xf32>
    %cst_5 = arith.constant 0.000000e+00 : f32
    %7 = vector.broadcast %cst_5 : f32 to vector<8x256xf32>
    %8 = arith.maximumf %6, %7 : vector<8x256xf32>
    %9 = arith.truncf %8 : vector<8x256xf32> to vector<8x256xbf16>
    %10 = vector.extract_strided_slice %9 {offsets = [0, 0], sizes = [8, 128], strides = [1, 1]} : vector<8x256xbf16> to vector<8x128xbf16>
    %c0_6 = arith.constant 0 : index
    %c0_7 = arith.constant 0 : index
    %c0_8 = arith.constant 0 : index
    %11 = vector.load %arg3[%c0_6, %c0_7, %c0_8] : memref<2x128x128xbf16, #tpu.memory_space<vmem>>, vector<1x128x128xbf16>
    %12 = vector.shape_cast %11 : vector<1x128x128xbf16> to vector<128x128xbf16>
    %cst_9 = arith.constant dense<0.000000e+00> : vector<8x128xf32>
    %13 = tpu.matmul %10, %12, %cst_9 {dimension_numbers = #tpu.dot_dimension_numbers<[1], [0], [0], [1], [0, 0, 1, 1], [], []>} : vector<8x128xbf16>, vector<128x128xbf16>, vector<8x128xf32> -> vector<8x128xf32>
    %14 = vector.extract_strided_slice %9 {offsets = [0, 128], sizes = [8, 128], strides = [1, 1]} : vector<8x256xbf16> to vector<8x128xbf16>
    %c1 = arith.constant 1 : index
    %c0_10 = arith.constant 0 : index
    %c0_11 = arith.constant 0 : index
    %15 = vector.load %arg3[%c1, %c0_10, %c0_11] : memref<2x128x128xbf16, #tpu.memory_space<vmem>>, vector<1x128x128xbf16>
    %16 = vector.shape_cast %15 : vector<1x128x128xbf16> to vector<128x128xbf16>
    %cst_12 = arith.constant dense<0.000000e+00> : vector<8x128xf32>
    %17 = tpu.matmul %14, %16, %cst_12 {dimension_numbers = #tpu.dot_dimension_numbers<[1], [0], [0], [1], [0, 0, 1, 1], [], []>} : vector<8x128xbf16>, vector<128x128xbf16>, vector<8x128xf32> -> vector<8x128xf32>
    %18 = tpu.concatenate %13, %17 in 1 : vector<8x128xf32>, vector<8x128xf32> -> vector<8x256xf32>
    %c1_13 = arith.constant 1 : index
    %c0_14 = arith.constant 0 : index
    %19 = vector.load %arg5[%c1_13, %c0_14] : memref<3x256xf32, #tpu.memory_space<vmem>>, vector<1x256xf32>
    %20 = vector.broadcast %19 : vector<1x256xf32> to vector<8x256xf32>
    %21 = arith.addf %18, %20 : vector<8x256xf32>
    %cst_15 = arith.constant 0.000000e+00 : f32
    %22 = vector.broadcast %cst_15 : f32 to vector<8x256xf32>
    %23 = arith.maximumf %21, %22 : vector<8x256xf32>
    %24 = arith.truncf %23 : vector<8x256xf32> to vector<8x256xbf16>
    %25 = vector.extract_strided_slice %24 {offsets = [0, 0], sizes = [8, 128], strides = [1, 1]} : vector<8x256xbf16> to vector<8x128xbf16>
    %c0_16 = arith.constant 0 : index
    %c0_17 = arith.constant 0 : index
    %c0_18 = arith.constant 0 : index
    %26 = vector.load %arg4[%c0_16, %c0_17, %c0_18] : memref<2x128x128xbf16, #tpu.memory_space<vmem>>, vector<1x128x128xbf16>
    %27 = vector.shape_cast %26 : vector<1x128x128xbf16> to vector<128x128xbf16>
    %cst_19 = arith.constant dense<0.000000e+00> : vector<8x128xf32>
    %28 = tpu.matmul %25, %27, %cst_19 {dimension_numbers = #tpu.dot_dimension_numbers<[1], [0], [0], [1], [0, 0, 1, 1], [], []>} : vector<8x128xbf16>, vector<128x128xbf16>, vector<8x128xf32> -> vector<8x128xf32>
    %29 = vector.extract_strided_slice %24 {offsets = [0, 128], sizes = [8, 128], strides = [1, 1]} : vector<8x256xbf16> to vector<8x128xbf16>
    %c1_20 = arith.constant 1 : index
    %c0_21 = arith.constant 0 : index
    %c0_22 = arith.constant 0 : index
    %30 = vector.load %arg4[%c1_20, %c0_21, %c0_22] : memref<2x128x128xbf16, #tpu.memory_space<vmem>>, vector<1x128x128xbf16>
    %31 = vector.shape_cast %30 : vector<1x128x128xbf16> to vector<128x128xbf16>
    %cst_23 = arith.constant dense<0.000000e+00> : vector<8x128xf32>
    %32 = tpu.matmul %29, %31, %cst_23 {dimension_numbers = #tpu.dot_dimension_numbers<[1], [0], [0], [1], [0, 0, 1, 1], [], []>} : vector<8x128xbf16>, vector<128x128xbf16>, vector<8x128xf32> -> vector<8x128xf32>
    %33 = tpu.concatenate %28, %32 in 1 : vector<8x128xf32>, vector<8x128xf32> -> vector<8x256xf32>
    %c2 = arith.constant 2 : index
    %c0_24 = arith.constant 0 : index
    %34 = vector.load %arg5[%c2, %c0_24] : memref<3x256xf32, #tpu.memory_space<vmem>>, vector<1x256xf32>
    %35 = vector.broadcast %34 : vector<1x256xf32> to vector<8x256xf32>
    %36 = arith.addf %33, %35 : vector<8x256xf32>
    %c0_25 = arith.constant 0 : index
    %c0_26 = arith.constant 0 : index
    %37 = vector.load %arg6[%c0_25, %c0_26] : memref<8x256xf32, #tpu.memory_space<vmem>>, vector<8x256xf32>
    tpu.vector_store %arg6[%c0_25, %c0_26], %36 {strides = array<i32>} : memref<8x256xf32, #tpu.memory_space<vmem>>, vector<8x256xf32>,
    return
  }
  func.func @transform_0(%arg0: i32) -> (i32, i32) {
    %c0_i32 = arith.constant 0 : i32
    %c0_i32_0 = arith.constant 0 : i32
    return %arg0, %c0_i32 : i32, i32
  }
  func.func @transform_1(%arg0: i32) -> (i32, i32) {
    %c0_i32 = arith.constant 0 : i32
    %c0_i32_0 = arith.constant 0 : i32
    %c0_i32_1 = arith.constant 0 : i32
    return %c0_i32, %c0_i32_0 : i32, i32
  }
  func.func @transform_2(%arg0: i32) -> (i32, i32, i32) {
    %c0_i32 = arith.constant 0 : i32
    %c0_i32_0 = arith.constant 0 : i32
    %c0_i32_1 = arith.constant 0 : i32
    %c0_i32_2 = arith.constant 0 : i32
    return %c0_i32, %c0_i32_0, %c0_i32_1 : i32, i32, i32
  }
  func.func @transform_3(%arg0: i32) -> (i32, i32, i32) {
    %c0_i32 = arith.constant 0 : i32
    %c0_i32_0 = arith.constant 0 : i32
    %c0_i32_1 = arith.constant 0 : i32
    %c0_i32_2 = arith.constant 0 : i32
    return %c0_i32, %c0_i32_0, %c0_i32_1 : i32, i32, i32
  }
  func.func @transform_4(%arg0: i32) -> (i32, i32) {
    %c0_i32 = arith.constant 0 : i32
    %c0_i32_0 = arith.constant 0 : i32
    %c0_i32_1 = arith.constant 0 : i32
    return %c0_i32, %c0_i32_0 : i32, i32
  }
  func.func @transform_5(%arg0: i32) -> (i32, i32) {
    %c0_i32 = arith.constant 0 : i32
    %c0_i32_0 = arith.constant 0 : i32
    return %arg0, %c0_i32 : i32, i32
  }
}

</mosaic_0001>

<bundles_post_ra>
// kernel: tpu_custom_call.1
= control target key start
LH: loop header
LB: loop body
LE: loop exit
PB: predicated region body
PF: predicated region fallthrough
CT: control target
= control target key end

     0   :  { %10 = vsyncpa [#allocation3], 0  ;;  %s923_s0 = inlined_call_operand.hbm [shape: f32[8,32], index: 0, kind: input, shape index: {}]   ;;  %s924_s1 = inlined_call_operand.hbm [shape: bf16[32,256], index: 1, kind: input, shape index: {}]   ;;  %s925_s2 = inlined_call_operand.hbm [shape: bf16[2,128,128], index: 2, kind: input, shape index: {}]   ;;  %s926_s3 = inlined_call_operand.hbm [shape: bf16[2,128,128], index: 3, kind: input, shape index: {}]   ;;  %s927_s4 = inlined_call_operand.hbm [shape: f32[3,256], index: 4, kind: input, shape index: {}]   ;;  %s928_s5 = inlined_call_operand.hbm [shape: f32[8,256], index: 5, kind: output, shape index: {}]  }
   0x1   :  { %11 = vsyncpa [#allocation6], 0 }
   0x2   :  { %12 = vsyncpa [#allocation9], 0  ;;  %s29_s20 = sshll.u32 %s924_s1, 4  ;;  %s30_s20 = int_to_ptr.hbm [resolvable:$true] %s29_s20 }
   0x3   :  { %13 = vsyncpa [#allocation4], 0  ;;  %s865_s21 = smov [#allocation5]   ;;  %s866_s23 = smov 128  }
   0x4   :  { %s31_s22 = sshll.u32 %s865_s21, 4  ;;  %s867_s24 = smov 8   ;;  %s32_s22 = int_to_ptr.vmem [resolvable:$true] %s31_s22 }
   0x5   :  { %37 = dma.hbm_to_vmem [thread:$0]  %s30_s20, 512, %s32_s22, [#allocation6], %s866_s23, %s866_s23, %s867_s24  }
   0x6   :  { %s55_s27 = sshll.u32 %s926_s3, 4  ;;  %s868_s28 = smov [#allocation8]   ;;  %s56_s27 = int_to_ptr.hbm [resolvable:$true] %s55_s27 }
   0x7   :  { %s57_s29 = sshll.u32 %s868_s28, 4  ;;  %s19_s7 = sshll.u32 %s923_s0, 4  ;;  %s58_s29 = int_to_ptr.vmem [resolvable:$true] %s57_s29  ;;  %s20_s7 = int_to_ptr.hbm [resolvable:$true] %s19_s7 }
   0x8   :  { %s869_s1 = smov 64   ;;  %s870_s8 = smov 4  }
   0x9   :  { %63 = dma.hbm_to_vmem [thread:$0]  %s56_s27, 2048, %s58_s29, [#allocation9], %s869_s1, %s869_s1, %s870_s8  }
   0xa   :  { %s42_s11 = sshll.u32 %s925_s2, 4  ;;  %s871_s12 = smov [#allocation2]   ;;  %s43_s11 = int_to_ptr.hbm [resolvable:$true] %s42_s11 }
   0xb   :  { %s21_s13 = sshll.u32 %s871_s12, 4  ;;  %s872_s3 = smov [#allocation7]   ;;  %s22_s13 = int_to_ptr.vmem [resolvable:$true] %s21_s13 }
   0xc   :  { %24 = dma.hbm_to_vmem [thread:$0]  %s20_s7, 128, %s22_s13, [#allocation3]  }
   0xd   :  { %s44_s14 = sshll.u32 %s872_s3, 4  ;;  %s69_s0 = sshll.u32 %s927_s4, 4  ;;  %s45_s14 = int_to_ptr.vmem [resolvable:$true] %s44_s14  ;;  %s70_s0 = int_to_ptr.hbm [resolvable:$true] %s69_s0 }
   0xe   :  { %50 = dma.hbm_to_vmem [thread:$0]  %s43_s11, 2048, %s45_s14, [#allocation6], %s869_s1, %s869_s1, %s870_s8  }
   0xf   :  { %s873_s17 = smov [#allocation10]  }
  0x10   :  { %s71_s18 = sshll.u32 %s873_s17, 4  ;;  %s72_s18 = int_to_ptr.vmem [resolvable:$true] %s71_s18 }
  0x11   :  { %74 = dma.hbm_to_vmem [thread:$0]  %s70_s0, 128, %s72_s18, [#allocation9]  }
  0x12   :  { %857 = dma.done.wait [#allocation3], 128  }
  0x13   :  { %858 = vsyncadd [#allocation3], 4294967168 }
  0x14   :  { %859 = dma.done.wait [#allocation6], 2560  }
  0x15   :  { %860 = vsyncadd [#allocation6], 4294964736 }
  0x16   :  { %861 = dma.done.wait [#allocation9], 2176  }
  0x17   :  { %862 = vsyncadd [#allocation9], 4294965120  ;;  %v531_v0 = vld [vmem:[#allocation5 + $0x10] sm:$0xf]  ;;  %v670_v1 = vld [vmem:[#allocation5 + $0x14] sm:$0xf0] }
  0x18   :  { %v669_v2 = vld [vmem:[#allocation5 + $0x14] sm:$0xf]  ;;  %v532_v3 = vor.u32 %v670_v1, %v531_v0  ;;  %v533_v4 = vld [vmem:[#allocation5 + $0x18] sm:$0xf0]  ;;  %v523_v5 = vld [vmem:[#allocation5] sm:$0xf] }
  0x19   :  { %v668_v6 = vld [vmem:[#allocation5 + $0x4] sm:$0xf0]  ;;  %v536_v7 = vor.u32 %v669_v2, %v533_v4  ;;  %v667_v8 = vld [vmem:[#allocation5 + $0x4] sm:$0xf]  ;;  %v525_v9 = vld [vmem:[#allocation5 + $0x8] sm:$0xf0] }
  0x1a   :  { %138 = vmatpush.bf16.msra.mxu0 %v532_v3  ;;  %v524_v10 = vor.u32 %v668_v6, %v523_v5  ;;  %v100_v11 = vld [vmem:[#allocation2] sm:$0xff]  ;;  %v528_v14 = vor.u32 %v667_v8, %v525_v9  ;;  %v677_v15 = vld [vmem:[#allocation7 + $0x30] sm:$0xff]  ;;  %vm128_vm0 = vcmask 261120   ;;  %v676_v18 = vld [vmem:[#allocation7 + $0x28] sm:$0xff]  ;;  %s874_s2 = smov [#allocation11]   ;;  %s509_s21 = sshll.u32 %s928_s5, 4  ;;  %s510_s21 = int_to_ptr.hbm [resolvable:$true] %s509_s21 }
  0x1b   :  { %v678_v12 = vld [vmem:[#allocation7 + $0x38] sm:$0xff]  ;;  %151 = vmatpush.bf16.msra.mxu1 %v536_v7  ;;  %v685_v16 = vld [vmem:[#allocation7 + $0x70] sm:$0xff]  ;;  %v101_v17 = vpack.c.bf16 %v100_v11, %v100_v11  ;;  %v684_v19 = vld [vmem:[#allocation7 + $0x68] sm:$0xff]  ;;  %s507_s4 = sshll.u32 %s874_s2, 4  ;;  %s508_s4 = int_to_ptr.vmem [resolvable:$true] %s507_s4 }
  0x1c   :  { %v686_v13 = vld [vmem:[#allocation7 + $0x78] sm:$0xff]  ;;  %225 = vmatpush.bf16.msra.mxu2 %v678_v12  ;;  %v675_v20 = vld [vmem:[#allocation7 + $0x20] sm:$0xff]  ;;  %v673_v24 = vld [vmem:[#allocation7 + $0x10] sm:$0xff] }
  0x1d   :  { %307 = vmatpush.bf16.msra.mxu3 %v686_v13  ;;  %v683_v21 = vld [vmem:[#allocation7 + $0x60] sm:$0xff]  ;;  %v674_v22 = vld [vmem:[#allocation7 + $0x18] sm:$0xff]  ;;  %v672_v25 = vld [vmem:[#allocation7 + $0x8] sm:$0xff] }
  0x1e   :  { %139 = vmatpush.bf16.msra.mxu0 %v524_v10  ;;  %v682_v23 = vld [vmem:[#allocation7 + $0x58] sm:$0xff]  ;;  %v681_v26 = vld [vmem:[#allocation7 + $0x50] sm:$0xff]  ;;  %v671_v27 = vld [vmem:[#allocation7] sm:$0xff] }
  0x1f   :  { %152 = vmatpush.bf16.msra.mxu1 %v528_v14  ;;  %v680_v28 = vld [vmem:[#allocation7 + $0x48] sm:$0xff]  ;;  %v679_v29 = vld [vmem:[#allocation7 + $0x40] sm:$0xff]  ;;  %v694_v30 = vld [vmem:[#allocation8 + $0x38] sm:$0xff] }
  0x20   :  { %226 = vmatpush.bf16.msra.mxu2 %v677_v15  ;;  %v702_v31 = vld [vmem:[#allocation8 + $0x78] sm:$0xff]  ;;  %v693_v32 = vld [vmem:[#allocation8 + $0x30] sm:$0xff]  ;;  %v692_v34 = vld [vmem:[#allocation8 + $0x28] sm:$0xff] }
  0x21   :  { %308 = vmatpush.bf16.msra.mxu3 %v685_v16  ;;  %537 = vmatmul.msk.bf16.vlgmr.msra.gmra.mxu0 %vm128_vm0, %v101_v17  ;;  %v701_v33 = vld [vmem:[#allocation8 + $0x70] sm:$0xff]  ;;  %v700_v35 = vld [vmem:[#allocation8 + $0x68] sm:$0xff]  ;;  %v691_v36 = vld [vmem:[#allocation8 + $0x20] sm:$0xff] }
  0x22   :  { %538 = vmatmul.msk.bf16.vlgmr.msra.gmra.mxu1 %vm128_vm0, %v101_v17  ;;  %396 = vmatpush.bf16.msrb.mxu0 %v694_v30  ;;  %v699_v37 = vld [vmem:[#allocation8 + $0x60] sm:$0xff]  ;;  %v690_v39 = vld [vmem:[#allocation8 + $0x18] sm:$0xff]  ;;  %v689_v53 = vld [vmem:[#allocation8 + $0x10] sm:$0xff] }
  0x23   :  { %478 = vmatpush.bf16.msrb.mxu1 %v702_v31  ;;  %v102_v38 = vld [vmem:[#allocation10] ss:$4 sm:$0x3]  ;;  %v698_v54 = vld [vmem:[#allocation8 + $0x58] sm:$0xff]  ;;  %v688_v55 = vld [vmem:[#allocation8 + $0x8] sm:$0xff] }
  0x24   :  { %227 = vmatpush.bf16.msra.mxu2 %v676_v18  ;;  %v104_v40 = vperm.slane %v102_v38, 0  ;;  %v105_v41 = vperm.slane %v102_v38, 1  ;;  %v697_v56 = vld [vmem:[#allocation8 + $0x50] sm:$0xff]  ;;  %v687_v57 = vld [vmem:[#allocation8] sm:$0xff]  ;;  %v696_v58 = vld [vmem:[#allocation8 + $0x48] sm:$0xff] }
  0x25   :  { %309 = vmatpush.bf16.msra.mxu3 %v684_v19  ;;  %v695_v59 = vld [vmem:[#allocation8 + $0x40] sm:$0xff] }
  0x26   :  { %397 = vmatpush.bf16.msrb.mxu0 %v693_v32  ;;  %v321_v60 = vld [vmem:[#allocation10 + $0x1] ss:$4 sm:$0x3]  ;;  %v492_v10 = vld [vmem:[#allocation10 + $0x2] ss:$4 sm:$0x3] }
  0x27   :  { %479 = vmatpush.bf16.msrb.mxu1 %v701_v33  ;;  %v323_v61 = vperm.slane %v321_v60, 0  ;;  %v324_v63 = vperm.slane %v321_v60, 1  ;;  %v494_v11 = vperm.slane %v492_v10, 0  ;;  %v495_v14 = vperm.slane %v492_v10, 1 }
  0x28   :  { %228 = vmatpush.bf16.msra.mxu2 %v675_v20 }
  0x29   :  { %310 = vmatpush.bf16.msra.mxu3 %v683_v21 }
  0x2a   :  { %398 = vmatpush.bf16.msrb.mxu0 %v692_v34 }
  0x2b   :  { %480 = vmatpush.bf16.msrb.mxu1 %v700_v35 }
  0x2c   :  { %229 = vmatpush.bf16.msra.mxu2 %v674_v22 }
  0x2d   :  { %311 = vmatpush.bf16.msra.mxu3 %v682_v23 }
  0x2e   :  { %399 = vmatpush.bf16.msrb.mxu0 %v691_v36 }
  0x2f   :  { %481 = vmatpush.bf16.msrb.mxu1 %v699_v37 }
  0x30   :  { %230 = vmatpush.bf16.msra.mxu2 %v673_v24 }
  0x31   :  { %312 = vmatpush.bf16.msra.mxu3 %v681_v26 }
  0x32   :  { %400 = vmatpush.bf16.msrb.mxu0 %v690_v39 }
  0x33   :  { %482 = vmatpush.bf16.msrb.mxu1 %v698_v54 }
  0x34   :  { %231 = vmatpush.bf16.msra.mxu2 %v672_v25 }
  0x35   :  { %313 = vmatpush.bf16.msra.mxu3 %v680_v28 }
  0x36   :  { %401 = vmatpush.bf16.msrb.mxu0 %v689_v53 }
  0x37   :  { %483 = vmatpush.bf16.msrb.mxu1 %v697_v56 }
  0x38   :  { %232 = vmatpush.bf16.msra.mxu2 %v671_v27 }
  0x39   :  { %314 = vmatpush.bf16.msra.mxu3 %v679_v29 }
  0x3a   :  { %402 = vmatpush.bf16.msrb.mxu0 %v688_v55 }
  0x3b   :  { %484 = vmatpush.bf16.msrb.mxu1 %v696_v58 }
  0x3e   :  { %403 = vmatpush.bf16.msrb.mxu0 %v687_v57 }
  0x3f   :  { %485 = vmatpush.bf16.msrb.mxu1 %v695_v59 }
  0x9e   :  { %v141_v42 = vpop.f32.mrf.mxu0 }
  0x9f   :  { %v142_v43 = vadd.f32 %v141_v42, %v104_v40  ;;  %v154_v44 = vpop.f32.mrf.mxu1 }
  0xa0   :  { %v155_v45 = vadd.f32 %v154_v44, %v105_v41 }
  0xa1   :  { %v158_v46 = vmax.f32 %v142_v43, 0.0 }
  0xa2   :  { %v159_v47 = vmax.f32 %v155_v45, 0.0 }
  0xa4   :  { %v160_v48 = vpack.c.bf16 %v159_v47, %v158_v46 }
  0xa6   :  { %233 = vmatmul.bf16.vlgmr.msra.gmra.mxu2 %v160_v48  ;;  %v143_v49 = vpop.f32.mrf.mxu0  ;;  %v256_v50 = vunpack.c.h.b16 %v160_v48 }
  0xa7   :  { %v156_v51 = vpop.f32.mrf.mxu1 }
  0xa8   :  { %v257_v52 = vpack.c.b16 %v256_v50, %v256_v50 }
  0xaa   :  { %315 = vmatmul.bf16.vlgmr.msra.gmra.mxu3 %v257_v52 }
 0x129   :  { %v234_v62 = vpop.f32.mrf.mxu2 }
 0x12a   :  { %v327_v0 = vadd.f32 %v323_v61, %v234_v62 }
 0x12c   :  { %v329_v3 = vmax.f32 %v327_v0, 0.0 }
 0x12d   :  { %v316_v1 = vpop.f32.mrf.mxu3 }
 0x12e   :  { %v328_v2 = vadd.f32 %v324_v63, %v316_v1 }
 0x130   :  { %v330_v4 = vmax.f32 %v328_v2, 0.0 }
 0x131   :  { %v236_v5 = vpop.f32.mrf.mxu2 }
 0x132   :  { %v331_v6 = vpack.c.bf16 %v330_v4, %v329_v3 }
 0x134   :  { %404 = vmatmul.bf16.vlgmr.msrb.gmra.mxu0 %v331_v6  ;;  %v427_v7 = vunpack.c.h.b16 %v331_v6 }
 0x135   :  { %v318_v8 = vpop.f32.mrf.mxu3 }
 0x136   :  { %v428_v9 = vpack.c.b16 %v427_v7, %v427_v7 }
 0x138   :  { %486 = vmatmul.bf16.vlgmr.msrb.gmra.mxu1 %v428_v9 }
 0x1b1   :  { %v405_v12 = vpop.f32.mrf.mxu0 }
 0x1b2   :  { %v498_v13 = vadd.f32 %v494_v11, %v405_v12 }
 0x1b4   :  { %500 = vst [vmem:[#allocation11] sm:$0xff] %v498_v13 }
 0x1b5   :  { %v487_v15 = vpop.f32.mrf.mxu1 }
 0x1b6   :  { %v499_v16 = vadd.f32 %v495_v14, %v487_v15 }
 0x1b8   :  { %501 = vst [vmem:[#allocation11 + $0x8] sm:$0xff] %v499_v16 }
 0x1b9   :  { %v407_v17 = vpop.f32.mrf.mxu0  ;;  %512 = dma.vmem_to_hbm [thread:$0]  %s508_s4, 256, %s510_s21, [#allocation4]  }
 0x1bd   :  { %v489_v18 = vpop.f32.mrf.mxu1 }
 0x1be   :  { %863 = dma.done.wait [#allocation4], 256  }
 0x1bf   :  { %864 = vsyncadd [#allocation4], 4294967040 }
 0x1c0   :  { %517 = vsyncpa [#allocation3], 1 }
 0x1c1   :  { %518 = vsyncpa [#allocation6], 1 }
 0x1c2   :  { %519 = vsyncpa [#allocation9], 1 }
 0x1c3   :  { %520 = vsyncpa [#allocation4], 1 }

</bundles_post_ra>
